<compile_context>
chip_gen: v5e
topology: v5e:2x2
jax: 0.10.0
libtpu: 0.0.40
codegen_flags: <defaults>
</compile_context>

<pallas_src>
import jax
import jax.numpy as jnp
from jax import lax
from jax.experimental import pallas as pl
from jax.experimental.pallas import tpu as pltpu

LANES = 128
SUBLANES = 8
MIN_TILE = SUBLANES * LANES          # 1024 elements = one (8,128) f32 tile
STRIP_ROWS = 512                     # inner strip: 512x128 f32 = 256 KiB
NUM_PARTIALS = 5                     # [sl1_all, sl1_nonpos, zero_cnt, |t-p|, |t|]
TARGET_BLOCK_BYTES = 8 << 20         # per-input per-block HBM->VMEM tile target


def _make_kernel(rows, block_rows, strip_rows, nblk, bpc, num_splits):
    n_strips = block_rows // strip_rows
    # Mask code is only generated if some grid step can see rows past the end
    # of the array (partial last block, or the phantom step the 2-way core
    # split adds when nblk is odd); even then only that step pays for it.
    needs_mask = (nblk * block_rows != rows) or (num_splits * bpc != nblk)

    def kernel(pred_ref, true_ref, acc_ref):
        @pl.when(pl.program_id(1) == 0)
        def _init():
            acc_ref[...] = jnp.zeros_like(acc_ref)

        def accumulate(valid_rows):
            if valid_rows is not None:
                row_ids = lax.broadcasted_iota(jnp.int32, (strip_rows, LANES), 0)

            def strip_body(s, carry):
                off = pl.multiple_of(s * strip_rows, strip_rows)
                p = pred_ref[pl.ds(off, strip_rows), :].astype(jnp.float32)
                t = true_ref[pl.ds(off, strip_rows), :].astype(jnp.float32)
                d = p - t
                ad = jnp.abs(d)
                sl1 = jnp.where(ad < 1.0, 0.5 * d * d, ad - 0.5)  # SmoothL1, beta=1
                at = jnp.abs(t)
                sl1_np = jnp.where(t <= 0.0, sl1, 0.0)            # t <= 0 bucket
                zf = (t == 0.0).astype(jnp.float32)
                contribs = [sl1, sl1_np, zf, ad, at]
                if valid_rows is not None:
                    m = row_ids < (valid_rows - off)
                    contribs = [jnp.where(m, x, 0.0) for x in contribs]
                # Fold (strip_rows,128) -> (8,128) with plain vreg-wise adds.
                for k, x in enumerate(contribs):
                    folded = jnp.sum(x.reshape(-1, SUBLANES, LANES), axis=0)
                    acc_ref[0, k * SUBLANES:(k + 1) * SUBLANES, :] += folded
                return carry

            lax.fori_loop(0, n_strips, strip_body, 0)

        if needs_mask:
            blk = pl.program_id(0) * bpc + pl.program_id(1)
            valid = rows - blk * block_rows        # <= 0 for phantom steps

            @pl.when(valid >= block_rows)
            def _full():
                accumulate(None)                   # fast, unmasked path

            @pl.when(valid < block_rows)
            def _partial():
                accumulate(valid)                  # masked path (one step)
        else:
            accumulate(None)

    return kernel


def _plan(total, itemsize_p, itemsize_t):
    """Static tiling plan (all Python ints)."""
    try:
        vmem_cap = int(pltpu.get_tpu_info().vmem_capacity_bytes)
    except Exception:                 # non-TPU / interpret fallbacks
        vmem_cap = 64 << 20           # v7x-safe assumption
    itemsize = max(itemsize_p, itemsize_t)
    per_input_bytes = min(TARGET_BLOCK_BYTES, vmem_cap // 8)

    # Pad only to a 128-lane boundary (usually pad == 0, i.e. no copy at all);
    # tiny inputs pad to a full (8,128) tile so the in-kernel fold always works.
    small = total < STRIP_ROWS * LANES
    align = MIN_TILE if small else LANES
    pad = (-total) % align
    rows = (total + pad) // LANES

    if rows <= STRIP_ROWS:
        block_rows = rows             # single full-extent block (always legal)
        strip_rows = rows
    else:
        target_rows = max(
            STRIP_ROWS,
            (per_input_bytes // (LANES * itemsize)) // STRIP_ROWS * STRIP_ROWS)
        block_rows = min(target_rows, (rows // STRIP_ROWS) * STRIP_ROWS)
        strip_rows = STRIP_ROWS

    nblk = pl.cdiv(rows, block_rows)
    num_splits = 2 if nblk >= 2 else 1      # use both TensorCores on v7x
    bpc = pl.cdiv(nblk, num_splits)

    blk_bytes = block_rows * LANES * (itemsize_p + itemsize_t)
    vmem_needed = 2 * blk_bytes + 2 * (NUM_PARTIALS * SUBLANES * LANES * 4) + (8 << 20)
    vmem_limit = int(min(max(vmem_needed, 16 << 20), vmem_cap * 9 // 10))
    return pad, rows, block_rows, strip_rows, nblk, num_splits, bpc, vmem_limit


def _pallas_partials(pred2, true2, block_rows, strip_rows, nblk, num_splits, bpc,
                     vmem_limit):
    rows = pred2.shape[0]

    def in_index(c, i):
        # Clamp phantom steps (odd nblk under the 2-way split) to the last
        # real block; the kernel masks their contribution to exactly zero.
        return (jnp.minimum(c * bpc + i, nblk - 1), 0)

    in_spec = pl.BlockSpec((block_rows, LANES), in_index)
    out_spec = pl.BlockSpec((1, NUM_PARTIALS * SUBLANES, LANES),
                            lambda c, i: (c, 0, 0))

    return pl.pallas_call(
        _make_kernel(rows, block_rows, strip_rows, nblk, bpc, num_splits),
        out_shape=jax.ShapeDtypeStruct(
            (num_splits, NUM_PARTIALS * SUBLANES, LANES), jnp.float32),
        grid_spec=pltpu.PrefetchScalarGridSpec(
            num_scalar_prefetch=0,
            grid=(num_splits, bpc),
            in_specs=[in_spec, in_spec],
            out_specs=out_spec,
        ),
        compiler_params=pltpu.CompilerParams(
            dimension_semantics=("parallel", "arbitrary"),
            vmem_limit_bytes=vmem_limit,
        ),
    )(pred2, true2)


def hybrid_dynamic_loss(y_pred, y_true, base_weight=0.1, alpha=0.8):
    if y_pred.shape != y_true.shape:
        raise ValueError("y_pred and y_true must have the same shape")
    total = int(y_true.size)

    flat_p = jnp.ravel(y_pred)          # free reshape, native dtype streams in
    flat_t = jnp.ravel(y_true)
    if flat_p.dtype.itemsize > 4:
        flat_p = flat_p.astype(jnp.float32)
    if flat_t.dtype.itemsize > 4:
        flat_t = flat_t.astype(jnp.float32)

    (pad, rows, block_rows, strip_rows, nblk,
     num_splits, bpc, vmem_limit) = _plan(
        total, flat_p.dtype.itemsize, flat_t.dtype.itemsize)

    if pad:
        # Zero padding is semantically free here (sl1/|t-p|/|t| all 0); only
        # the zero count over-counts by `pad`, corrected statically below.
        flat_p = jnp.concatenate([flat_p, jnp.zeros((pad,), flat_p.dtype)])
        flat_t = jnp.concatenate([flat_t, jnp.zeros((pad,), flat_t.dtype)])
    pred2 = flat_p.reshape(rows, LANES)     # free: full-array reshape
    true2 = flat_t.reshape(rows, LANES)

    partials = _pallas_partials(pred2, true2, block_rows, strip_rows, nblk,
                                num_splits, bpc, vmem_limit)
    sums = jnp.sum(
        partials.reshape(num_splits, NUM_PARTIALS, SUBLANES * LANES),
        axis=(0, 2))

    sum_sl1_all = sums[0]
    sum_sl1_nonpos = sums[1]
    zeros = sums[2] - jnp.float32(pad)      # padded zeros are not part of y_true
    sum_adiff = sums[3]
    sum_atrue = sums[4]

    # Scalar epilogue (matches the PyTorch formulas exactly).
    total_f = jnp.float32(total)
    zero_ratio = zeros / (total_f + 1e-8)
    no_goods_weight = jnp.float32(base_weight) * jnp.exp(-3.0 * zero_ratio)
    # sum_{t>0} sl1 + w0 * sum_{t<=0} sl1  ==  sum_all - (1 - w0) * sum_{t<=0}
    huber = (sum_sl1_all - (1.0 - no_goods_weight) * sum_sl1_nonpos) / total_f
    wmape = sum_adiff / (sum_atrue + 1e-6)
    return jnp.float32(alpha) * huber + jnp.float32(1.0 - alpha) * wmape


def _reference(y_pred, y_true, base_weight=0.1, alpha=0.8):
    y_pred = y_pred.astype(jnp.float32)
    y_true = y_true.astype(jnp.float32)
    zeros = jnp.sum((y_true == 0).astype(jnp.float32))
    total = y_true.size
    zero_ratio = zeros / (total + 1e-8)
    w0 = base_weight * jnp.exp(-3.0 * zero_ratio)
    weights = jnp.where(y_true > 0, 1.0, w0)
    d = y_pred - y_true
    ad = jnp.abs(d)
    sl1 = jnp.where(ad < 1.0, 0.5 * d * d, ad - 0.5)
    huber = jnp.mean(sl1 * weights)
    wmape = jnp.sum(jnp.abs(y_true - y_pred)) / (jnp.sum(jnp.abs(y_true)) + 1e-6)
    return alpha * huber + (1 - alpha) * wmape


if __name__ == "__main__":
    def make_inputs(key, shape):
        k1, k2, k3 = jax.random.split(key, 3)
        y_pred = jax.random.normal(k1, shape, dtype=jnp.float32)
        y_true = jnp.abs(jax.random.normal(k2, shape, dtype=jnp.float32))
        drop = jax.random.uniform(k3, shape) < 0.4       # sparsify the target
        y_true = jnp.where(drop, 0.0, y_true)
        return y_pred, y_true

    def check(key, shape):
        yp, yt = make_inputs(key, shape)
        out = jax.block_until_ready(hybrid_dynamic_loss(yp, yt))
        ref = jax.block_until_ready(_reference(yp, yt))
        assert jnp.allclose(out, ref, rtol=1e-4, atol=1e-5), (shape, out, ref)

    # Primary shape (B, C, H, W): 2048 elements -> single aligned block.
    check(jax.random.PRNGKey(0), (2, 4, 16, 16))
    # Odd-sized shape: exercises the (tiny) zero-pad path + static correction.
    check(jax.random.PRNGKey(1), (3, 7, 11, 5))
    # Medium 128-aligned shape: multi-block, 2-way core split, masked last block.
    check(jax.random.PRNGKey(2), (4, 8, 136, 24))

    print("KERNEL_OK")
</pallas_src>

<mosaic_0001>
module attributes {stable_mosaic.version = 11 : i64} {
  func.func @kernel(%arg0: i32, %arg1: i32, %arg2: memref<16x128xf32, #tpu.memory_space<vmem>>, %arg3: memref<16x128xf32, #tpu.memory_space<vmem>>, %arg4: memref<1x40x128xf32, #tpu.memory_space<vmem>>) attributes {dimension_semantics = [#tpu.dimension_semantics<parallel>, #tpu.dimension_semantics<arbitrary>], iteration_bounds = array<i64: 1, 1>, scalar_prefetch = 0 : i64, scratch_operands = 0 : i64, tpu.core_type = #tpu.core_type<tc>, window_params = [{transform_indices = @transform_0, window_bounds = array<i64: 16, 128>}, {transform_indices = @transform_1, window_bounds = array<i64: 16, 128>}, {transform_indices = @transform_2, window_bounds = array<i64: 1, 40, 128>}]} {
    %c0_i32 = arith.constant 0 : i32
    %0 = arith.cmpi eq, %arg1, %c0_i32 : i32
    %1 = arith.extui %0 : i1 to i32
    %c0_i32_0 = arith.constant 0 : i32
    %2 = arith.cmpi ne, %1, %c0_i32_0 : i32
    scf.if %2 {
      %cst_39 = arith.constant 0.000000e+00 : f32
      %68 = vector.broadcast %cst_39 : f32 to vector<1x40x128xf32>
      %c0_40 = arith.constant 0 : index
      %c0_41 = arith.constant 0 : index
      %c0_42 = arith.constant 0 : index
      %69 = vector.load %arg4[%c0_40, %c0_41, %c0_42] : memref<1x40x128xf32, #tpu.memory_space<vmem>>, vector<1x40x128xf32>
      tpu.vector_store %arg4[%c0_40, %c0_41, %c0_42], %68 {strides = array<i32>} : memref<1x40x128xf32, #tpu.memory_space<vmem>>, vector<1x40x128xf32>,
    } else {
    }
    %c0_i32_1 = arith.constant 0 : i32
    %c16_i32 = arith.constant 16 : i32
    %3 = arith.muli %c0_i32_1, %c16_i32 : i32
    %4 = tpu.assume_multiple %3, 16 : i32
    %5 = arith.index_cast %4 : i32 to index
    %c0 = arith.constant 0 : index
    %6 = vector.load %arg2[%5, %c0] : memref<16x128xf32, #tpu.memory_space<vmem>>, vector<16x128xf32>
    %7 = arith.index_cast %4 : i32 to index
    %c0_2 = arith.constant 0 : index
    %8 = vector.load %arg3[%7, %c0_2] : memref<16x128xf32, #tpu.memory_space<vmem>>, vector<16x128xf32>
    %9 = arith.subf %6, %8 : vector<16x128xf32>
    %10 = math.absf %9 : vector<16x128xf32>
    %cst = arith.constant 1.000000e+00 : f32
    %11 = vector.broadcast %cst : f32 to vector<16x128xf32>
    %12 = arith.cmpf olt, %10, %11 : vector<16x128xf32>
    %cst_3 = arith.constant 5.000000e-01 : f32
    %13 = vector.broadcast %cst_3 : f32 to vector<16x128xf32>
    %14 = arith.mulf %13, %9 : vector<16x128xf32>
    %15 = arith.mulf %14, %9 : vector<16x128xf32>
    %cst_4 = arith.constant 5.000000e-01 : f32
    %16 = vector.broadcast %cst_4 : f32 to vector<16x128xf32>
    %17 = arith.subf %10, %16 : vector<16x128xf32>
    %18 = arith.select %12, %15, %17 : vector<16x128xi1>, vector<16x128xf32>
    %19 = math.absf %8 : vector<16x128xf32>
    %cst_5 = arith.constant 0.000000e+00 : f32
    %20 = vector.broadcast %cst_5 : f32 to vector<16x128xf32>
    %21 = arith.cmpf ole, %8, %20 : vector<16x128xf32>
    %cst_6 = arith.constant 0.000000e+00 : f32
    %22 = vector.broadcast %cst_6 : f32 to vector<16x128xf32>
    %23 = arith.select %21, %18, %22 : vector<16x128xi1>, vector<16x128xf32>
    %cst_7 = arith.constant 0.000000e+00 : f32
    %24 = vector.broadcast %cst_7 : f32 to vector<16x128xf32>
    %25 = arith.cmpf oeq, %8, %24 : vector<16x128xf32>
    %26 = arith.extui %25 : vector<16x128xi1> to vector<16x128xi32>
    %27 = arith.sitofp %26 : vector<16x128xi32> to vector<16x128xf32>
    %28 = vector.shape_cast %18 : vector<16x128xf32> to vector<2x8x128xf32>
    %cst_8 = arith.constant dense<0.000000e+00> : vector<8x128xf32>
    %29 = vector.multi_reduction <add>, %28, %cst_8 [0] : vector<2x8x128xf32> to vector<8x128xf32>
    %c0_9 = arith.constant 0 : index
    %c0_10 = arith.constant 0 : index
    %c0_11 = arith.constant 0 : index
    %30 = vector.load %arg4[%c0_9, %c0_10, %c0_11] : memref<1x40x128xf32, #tpu.memory_space<vmem>>, vector<1x8x128xf32>
    %31 = vector.shape_cast %30 : vector<1x8x128xf32> to vector<8x128xf32>
    %32 = arith.addf %31, %29 : vector<8x128xf32>
    %c0_12 = arith.constant 0 : index
    %c0_13 = arith.constant 0 : index
    %c0_14 = arith.constant 0 : index
    %33 = vector.load %arg4[%c0_12, %c0_13, %c0_14] : memref<1x40x128xf32, #tpu.memory_space<vmem>>, vector<1x8x128xf32>
    %34 = vector.shape_cast %33 : vector<1x8x128xf32> to vector<8x128xf32>
    %35 = vector.shape_cast %32 : vector<8x128xf32> to vector<1x8x128xf32>
    tpu.vector_store %arg4[%c0_12, %c0_13, %c0_14], %35 {strides = array<i32>} : memref<1x40x128xf32, #tpu.memory_space<vmem>>, vector<1x8x128xf32>,
    %36 = vector.shape_cast %23 : vector<16x128xf32> to vector<2x8x128xf32>
    %cst_15 = arith.constant dense<0.000000e+00> : vector<8x128xf32>
    %37 = vector.multi_reduction <add>, %36, %cst_15 [0] : vector<2x8x128xf32> to vector<8x128xf32>
    %c0_16 = arith.constant 0 : index
    %c8 = arith.constant 8 : index
    %c0_17 = arith.constant 0 : index
    %38 = vector.load %arg4[%c0_16, %c8, %c0_17] : memref<1x40x128xf32, #tpu.memory_space<vmem>>, vector<1x8x128xf32>
    %39 = vector.shape_cast %38 : vector<1x8x128xf32> to vector<8x128xf32>
    %40 = arith.addf %39, %37 : vector<8x128xf32>
    %c0_18 = arith.constant 0 : index
    %c8_19 = arith.constant 8 : index
    %c0_20 = arith.constant 0 : index
    %41 = vector.load %arg4[%c0_18, %c8_19, %c0_20] : memref<1x40x128xf32, #tpu.memory_space<vmem>>, vector<1x8x128xf32>
    %42 = vector.shape_cast %41 : vector<1x8x128xf32> to vector<8x128xf32>
    %43 = vector.shape_cast %40 : vector<8x128xf32> to vector<1x8x128xf32>
    tpu.vector_store %arg4[%c0_18, %c8_19, %c0_20], %43 {strides = array<i32>} : memref<1x40x128xf32, #tpu.memory_space<vmem>>, vector<1x8x128xf32>,
    %44 = vector.shape_cast %27 : vector<16x128xf32> to vector<2x8x128xf32>
    %cst_21 = arith.constant dense<0.000000e+00> : vector<8x128xf32>
    %45 = vector.multi_reduction <add>, %44, %cst_21 [0] : vector<2x8x128xf32> to vector<8x128xf32>
    %c0_22 = arith.constant 0 : index
    %c16 = arith.constant 16 : index
    %c0_23 = arith.constant 0 : index
    %46 = vector.load %arg4[%c0_22, %c16, %c0_23] : memref<1x40x128xf32, #tpu.memory_space<vmem>>, vector<1x8x128xf32>
    %47 = vector.shape_cast %46 : vector<1x8x128xf32> to vector<8x128xf32>
    %48 = arith.addf %47, %45 : vector<8x128xf32>
    %c0_24 = arith.constant 0 : index
    %c16_25 = arith.constant 16 : index
    %c0_26 = arith.constant 0 : index
    %49 = vector.load %arg4[%c0_24, %c16_25, %c0_26] : memref<1x40x128xf32, #tpu.memory_space<vmem>>, vector<1x8x128xf32>
    %50 = vector.shape_cast %49 : vector<1x8x128xf32> to vector<8x128xf32>
    %51 = vector.shape_cast %48 : vector<8x128xf32> to vector<1x8x128xf32>
    tpu.vector_store %arg4[%c0_24, %c16_25, %c0_26], %51 {strides = array<i32>} : memref<1x40x128xf32, #tpu.memory_space<vmem>>, vector<1x8x128xf32>,
    %52 = vector.shape_cast %10 : vector<16x128xf32> to vector<2x8x128xf32>
    %cst_27 = arith.constant dense<0.000000e+00> : vector<8x128xf32>
    %53 = vector.multi_reduction <add>, %52, %cst_27 [0] : vector<2x8x128xf32> to vector<8x128xf32>
    %c0_28 = arith.constant 0 : index
    %c24 = arith.constant 24 : index
    %c0_29 = arith.constant 0 : index
    %54 = vector.load %arg4[%c0_28, %c24, %c0_29] : memref<1x40x128xf32, #tpu.memory_space<vmem>>, vector<1x8x128xf32>
    %55 = vector.shape_cast %54 : vector<1x8x128xf32> to vector<8x128xf32>
    %56 = arith.addf %55, %53 : vector<8x128xf32>
    %c0_30 = arith.constant 0 : index
    %c24_31 = arith.constant 24 : index
    %c0_32 = arith.constant 0 : index
    %57 = vector.load %arg4[%c0_30, %c24_31, %c0_32] : memref<1x40x128xf32, #tpu.memory_space<vmem>>, vector<1x8x128xf32>
    %58 = vector.shape_cast %57 : vector<1x8x128xf32> to vector<8x128xf32>
    %59 = vector.shape_cast %56 : vector<8x128xf32> to vector<1x8x128xf32>
    tpu.vector_store %arg4[%c0_30, %c24_31, %c0_32], %59 {strides = array<i32>} : memref<1x40x128xf32, #tpu.memory_space<vmem>>, vector<1x8x128xf32>,
    %60 = vector.shape_cast %19 : vector<16x128xf32> to vector<2x8x128xf32>
    %cst_33 = arith.constant dense<0.000000e+00> : vector<8x128xf32>
    %61 = vector.multi_reduction <add>, %60, %cst_33 [0] : vector<2x8x128xf32> to vector<8x128xf32>
    %c0_34 = arith.constant 0 : index
    %c32 = arith.constant 32 : index
    %c0_35 = arith.constant 0 : index
    %62 = vector.load %arg4[%c0_34, %c32, %c0_35] : memref<1x40x128xf32, #tpu.memory_space<vmem>>, vector<1x8x128xf32>
    %63 = vector.shape_cast %62 : vector<1x8x128xf32> to vector<8x128xf32>
    %64 = arith.addf %63, %61 : vector<8x128xf32>
    %c0_36 = arith.constant 0 : index
    %c32_37 = arith.constant 32 : index
    %c0_38 = arith.constant 0 : index
    %65 = vector.load %arg4[%c0_36, %c32_37, %c0_38] : memref<1x40x128xf32, #tpu.memory_space<vmem>>, vector<1x8x128xf32>
    %66 = vector.shape_cast %65 : vector<1x8x128xf32> to vector<8x128xf32>
    %67 = vector.shape_cast %64 : vector<8x128xf32> to vector<1x8x128xf32>
    tpu.vector_store %arg4[%c0_36, %c32_37, %c0_38], %67 {strides = array<i32>} : memref<1x40x128xf32, #tpu.memory_space<vmem>>, vector<1x8x128xf32>,
    %c1_i32 = arith.constant 1 : i32
    return
  }
  func.func @transform_0(%arg0: i32, %arg1: i32) -> (i32, i32) {
    %c1_i32 = arith.constant 1 : i32
    %0 = arith.muli %arg0, %c1_i32 : i32
    %1 = arith.addi %0, %arg1 : i32
    %c0_i32 = arith.constant 0 : i32
    %2 = arith.minsi %1, %c0_i32 : i32
    %c0_i32_0 = arith.constant 0 : i32
    %c0_i32_1 = arith.constant 0 : i32
    return %2, %c0_i32_0 : i32, i32
  }
  func.func @transform_1(%arg0: i32, %arg1: i32) -> (i32, i32) {
    %c1_i32 = arith.constant 1 : i32
    %0 = arith.muli %arg0, %c1_i32 : i32
    %1 = arith.addi %0, %arg1 : i32
    %c0_i32 = arith.constant 0 : i32
    %2 = arith.minsi %1, %c0_i32 : i32
    %c0_i32_0 = arith.constant 0 : i32
    %c0_i32_1 = arith.constant 0 : i32
    return %2, %c0_i32_0 : i32, i32
  }
  func.func @transform_2(%arg0: i32, %arg1: i32) -> (i32, i32, i32) {
    %c0_i32 = arith.constant 0 : i32
    %c0_i32_0 = arith.constant 0 : i32
    %c0_i32_1 = arith.constant 0 : i32
    return %arg0, %c0_i32, %c0_i32_0 : i32, i32, i32
  }
}

</mosaic_0001>

<bundles_post_ra>
// kernel: tpu_custom_call.1
= control target key start
LH: loop header
LB: loop body
LE: loop exit
PB: predicated region body
PF: predicated region fallthrough
CT: control target
= control target key end

     0   :  { %7 = vsyncpa [#allocation3], 0  ;;  %s275_s0 = inlined_call_operand.hbm [shape: f32[16,128], index: 0, kind: input, shape index: {}]   ;;  %s276_s1 = inlined_call_operand.hbm [shape: f32[16,128], index: 1, kind: input, shape index: {}]   ;;  %s277_s2 = inlined_call_operand.hbm [shape: f32[1,40,128], index: 2, kind: output, shape index: {}]  }
   0x1   :  { %8 = vsyncpa [#allocation6], 0 }
   0x2   :  { %9 = vsyncpa [#allocation4], 0  ;;  %s20_s11 = sshll.u32 %s275_s0, 4  ;;  %s235_s12 = smov [#allocation2]   ;;  %s21_s11 = int_to_ptr.hbm [resolvable:$true] %s20_s11 }
   0x3   :  { %s22_s13 = sshll.u32 %s235_s12, 4  ;;  %s39_s16 = sshll.u32 %s276_s1, 4  ;;  %s23_s13 = int_to_ptr.vmem [resolvable:$true] %s22_s13  ;;  %s40_s16 = int_to_ptr.hbm [resolvable:$true] %s39_s16 }
   0x4   :  { %s236_s17 = smov 128   ;;  %s237_s18 = smov 8  }
   0x5   :  { %28 = dma.hbm_to_vmem [thread:$0]  %s21_s11, 256, %s23_s13, [#allocation3], %s236_s17, %s236_s17, %s237_s18  }
   0x6   :  { %s238_s19 = smov [#allocation5]  }
   0x7   :  { %s41_s20 = sshll.u32 %s238_s19, 4  ;;  %s42_s20 = int_to_ptr.vmem [resolvable:$true] %s41_s20 }
   0x8   :  { %47 = dma.hbm_to_vmem [thread:$0]  %s40_s16, 256, %s42_s20, [#allocation6], %s236_s17, %s236_s17, %s237_s18  }
   0x9   :  { %229 = dma.done.wait [#allocation3], 256  }
   0xa   :  { %230 = vsyncadd [#allocation3], 4294967040 }
   0xb   :  { %231 = dma.done.wait [#allocation6], 256  }
   0xc   :  { %232 = vsyncadd [#allocation6], 4294967040  ;;  %v73_v0 = vld [vmem:[#allocation2] sm:$0xff]  ;;  %v74_v1 = vld [vmem:[#allocation2 + $0x8] sm:$0xff]  ;;  %v239_v7 = vmov 0.0   ;;  %s240_s0 = smov [#allocation7]  }
   0xd   :  { %v75_v2 = vld [vmem:[#allocation5] sm:$0xff]  ;;  %v76_v3 = vld [vmem:[#allocation5 + $0x8] sm:$0xff]  ;;  %s127_s1 = sshll.u32 %s240_s0, 4  ;;  %s129_s23 = sshll.u32 %s277_s2, 4  ;;  %s128_s1 = int_to_ptr.vmem [resolvable:$true] %s127_s1  ;;  %s130_s23 = int_to_ptr.hbm [resolvable:$true] %s129_s23 }
   0xe   :  { %v77_v4 = vsub.f32 %v73_v0, %v75_v2  ;;  %vm97_vm0 = vcmp.eq.f32.partialorder %v75_v2, 0.0  ;;  %v91_v5 = vand.u32 2147483647, %v75_v2  ;;  %v78_v6 = vsub.f32 %v74_v1, %v76_v3 }
   0xf   :  { %vm93_vm1 = vcmp.le.f32.partialorder %v75_v2, 0.0  ;;  %vm98_vm2 = vcmp.eq.f32.partialorder %v76_v3, 0.0  ;;  %v149_v8 = vsel %vm97_vm0, 1.0, %v239_v7  ;;  %v92_v12 = vand.u32 2147483647, %v76_v3 }
  0x10   :  { %v79_v9 = vand.u32 2147483647, %v77_v4  ;;  %v83_v10 = vmul.f32 0.5, %v77_v4  ;;  %v150_v11 = vsel %vm98_vm2, 1.0, %v239_v7  ;;  %v80_v13 = vand.u32 2147483647, %v78_v6 }
  0x11   :  { %v84_v14 = vmul.f32 0.5, %v78_v6  ;;  %vm94_vm3 = vcmp.le.f32.partialorder %v76_v3, 0.0  ;;  %v111_v15 = vadd.f32 %v150_v11, %v149_v8  ;;  %v119_v18 = vadd.f32 %v92_v12, %v91_v5 }
  0x12   :  { %vm81_vm4 = vcmp.lt.f32.partialorder %v79_v9, 1.0  ;;  %v85_v16 = vmul.f32 %v83_v10, %v77_v4  ;;  %v147_v17 = vadd.f32 -0.5, %v79_v9  ;;  %vm82_vm5 = vcmp.lt.f32.partialorder %v80_v13, 1.0 }
  0x13   :  { %v86_v19 = vmul.f32 %v84_v14, %v78_v6  ;;  %v148_v20 = vadd.f32 -0.5, %v80_v13  ;;  %v115_v22 = vadd.f32 %v80_v13, %v79_v9  ;;  %114 = vst [vmem:[#allocation7 + $0x10] sm:$0xff] %v111_v15 }
  0x14   :  { %v89_v21 = vsel %vm81_vm4, %v85_v16, %v147_v17  ;;  %122 = vst [vmem:[#allocation7 + $0x20] sm:$0xff] %v119_v18 }
  0x15   :  { %v90_v23 = vsel %vm82_vm5, %v86_v19, %v148_v20  ;;  %v95_v24 = vsel %vm93_vm1, %v89_v21, 0.0  ;;  %118 = vst [vmem:[#allocation7 + $0x18] sm:$0xff] %v115_v22 }
  0x16   :  { %v103_v25 = vadd.f32 %v90_v23, %v89_v21  ;;  %v96_v26 = vsel %vm94_vm3, %v90_v23, 0.0 }
  0x17   :  { %v107_v27 = vadd.f32 %v96_v26, %v95_v24 }
  0x18   :  { %106 = vst [vmem:[#allocation7] sm:$0xff] %v103_v25 }
  0x19   :  { %110 = vst [vmem:[#allocation7 + $0x8] sm:$0xff] %v107_v27 }
  0x1a   :  { %135 = dma.vmem_to_hbm [thread:$0]  %s128_s1, 640, %s130_s23, [#allocation4], %s236_s17, %s236_s17, %s237_s18  }
  0x1b   :  { %233 = dma.done.wait [#allocation4], 640  }
  0x1c   :  { %234 = vsyncadd [#allocation4], 4294966656 }
  0x1d   :  { %140 = vsyncpa [#allocation3], 1 }
  0x1e   :  { %141 = vsyncpa [#allocation6], 1 }
  0x1f   :  { %142 = vsyncpa [#allocation4], 1 }

</bundles_post_ra>
